<compile_context>
chip_gen: v6e
topology: v6e:2x2x1
jax: 0.10.0
libtpu: 0.0.40
codegen_flags: <defaults>
</compile_context>

<pallas_src>
import jax
import jax.numpy as jnp
from jax import lax
from jax.experimental import pallas as pl
from jax.experimental.pallas import tpu as pltpu

_EPS = 1e-5


def _round_up(v, m):
    return (v + m - 1) // m * m


def _taps3(a, not_first, not_last):
    """Build the 3-tap conv operand [x[l-1]; x[l]; x[l+1]] stacked on channels.

    `a` is (C, L) f32.  Shifts are lane rotations on the XLU (pltpu.roll) with the
    wrapped boundary column zeroed by a multiplicative iota mask; the result is
    cast once to bf16 for the MXU.
    """
    l = a.shape[1]
    xm = pltpu.roll(a, shift=1, axis=1) * not_first       # x[l-1], col 0 zeroed
    xp = pltpu.roll(a, shift=l - 1, axis=1) * not_last    # x[l+1], col L-1 zeroed
    return jnp.concatenate([xm, a, xp], axis=0).astype(jnp.bfloat16)  # (3C, L)


def _lane_masks(c, l):
    lane = lax.broadcasted_iota(jnp.int32, (c, l), 1)
    not_first = (lane != 0).astype(jnp.float32)
    not_last = (lane != l - 1).astype(jnp.float32)
    return not_first, not_last


def _conv1_kernel(x_ref, w1_ref, b1_ref, h1_ref, st1_ref):
    """conv1 (k=3,p=1) + merged partial BN1 stats, B_TILE batches per step."""
    bt, ci, l = x_ref.shape
    co = h1_ref.shape[1]
    not_first, not_last = _lane_masks(ci, l)
    ssum = jnp.zeros((co, 1), jnp.float32)
    sq = jnp.zeros((co, 1), jnp.float32)
    for bi in range(bt):                                   # static unroll, small
        taps = _taps3(x_ref[bi], not_first, not_last)      # (3Ci, L) bf16
        h = jnp.dot(w1_ref[...], taps,
                    preferred_element_type=jnp.float32) + b1_ref[...]
        h1_ref[bi] = h.astype(h1_ref.dtype)                # bf16 to HBM
        ssum = ssum + jnp.sum(h, axis=1, keepdims=True)
        sq = sq + jnp.sum(h * h, axis=1, keepdims=True)
    st1_ref[0] = jnp.concatenate([ssum, sq], axis=1)       # one (Co, 2) store


def _conv2_kernel(h1_ref, sc1_ref, sh1_ref, w2_ref, b2_ref, h2_ref, st2_ref):
    """BN1 (f32) + ReLU + conv2 + merged partial BN2 stats."""
    bt, co, l = h1_ref.shape
    not_first, not_last = _lane_masks(co, l)
    ssum = jnp.zeros((co, 1), jnp.float32)
    sq = jnp.zeros((co, 1), jnp.float32)
    for bi in range(bt):
        a1 = jnp.maximum(
            h1_ref[bi].astype(jnp.float32) * sc1_ref[...] + sh1_ref[...], 0.0)
        taps = _taps3(a1, not_first, not_last)             # (3Co, L) bf16
        h = jnp.dot(w2_ref[...], taps,
                    preferred_element_type=jnp.float32) + b2_ref[...]
        h2_ref[bi] = h.astype(h2_ref.dtype)
        ssum = ssum + jnp.sum(h, axis=1, keepdims=True)
        sq = sq + jnp.sum(h * h, axis=1, keepdims=True)
    st2_ref[0] = jnp.concatenate([ssum, sq], axis=1)


def _bn_add_relu_kernel(h2_ref, x_ref, wr_ref, br_ref, sc2_ref, sh2_ref, o_ref):
    """BN2 + recomputed 1x1-conv residual + add + ReLU (all f32 elementwise)."""
    bt = h2_ref.shape[0]
    for bi in range(bt):
        res = jnp.dot(wr_ref[...], x_ref[bi],
                      preferred_element_type=jnp.float32) + br_ref[...]
        o_ref[bi] = jnp.maximum(
            h2_ref[bi].astype(jnp.float32) * sc2_ref[...] + sh2_ref[...] + res,
            0.0)


@jax.jit
def residual_block(x_ncl, params):
    """x_ncl: (N, Cin, L) float32 (PyTorch NCL layout). Returns (N, Cout, L).

    For in_channels == out_channels pass wr = identity, br = zeros (== Identity).
    """
    (w1, b1, g1, bt1, w2, b2, g2, bt2, wr, br) = params
    N, Cin, L = x_ncl.shape
    Cout = w1.shape[0]
    f32, bf16 = jnp.float32, jnp.bfloat16
    Ci = _round_up(Cin, 8)                 # 8-aligned sublane bands
    Co = _round_up(Cout, 8)

    # --- batch packing: several (C, L) slabs per grid step when L is small ---
    B_TILE = 1
    for cand in range(1, N + 1):
        if N % cand == 0 and cand * L <= 2048 and cand <= 8:
            B_TILE = cand
    G = N // B_TILE

    # --- input layout: skip the padding copy when already aligned/f32 ---
    if Cin == Ci and x_ncl.dtype == f32:
        x = x_ncl
    else:
        x = jnp.zeros((N, Ci, L), f32).at[:, :Cin, :].set(x_ncl.astype(f32))

    # --- parameter re-layout (tiny, wrapper-side) ---
    def stack_w(w, cin, cin_p):
        # (Cout, cin, 3) -> (Co, 3*cin_p): tap-major channel bands, bf16 for MXU.
        wp = jnp.zeros((Co, 3, cin_p), f32).at[:w.shape[0], :, :cin].set(
            jnp.transpose(w.astype(f32), (0, 2, 1)))
        return wp.reshape(Co, 3 * cin_p).astype(bf16)

    w1s = stack_w(w1, Cin, Ci)                             # (Co, 3*Ci) bf16
    w2s = stack_w(w2, Cout, Co)                            # (Co, 3*Co) bf16
    wrp = jnp.zeros((Co, Ci), f32).at[:Cout, :Cin].set(wr.astype(f32))
    col = lambda v: jnp.zeros((Co, 1), f32).at[:v.shape[0], 0].set(v.astype(f32))
    b1c, b2c, brc = col(b1), col(b2), col(br)

    cparams = pltpu.CompilerParams(
        dimension_semantics=("parallel",),                 # batch tiles independent
        vmem_limit_bytes=64 * 1024 * 1024)

    blk_x = pl.BlockSpec((B_TILE, Ci, L), lambda g: (g, 0, 0))
    blk_h = pl.BlockSpec((B_TILE, Co, L), lambda g: (g, 0, 0))
    blk_st = pl.BlockSpec((1, Co, 2), lambda g: (g, 0, 0))
    rep = lambda shape: pl.BlockSpec(shape, lambda g: (0,) * len(shape))

    # -------- pass 1: conv1 + partial BN1 stats (bf16 h1 to HBM) --------
    h1, st1 = pl.pallas_call(
        _conv1_kernel,
        grid=(G,),
        in_specs=[blk_x, rep((Co, 3 * Ci)), rep((Co, 1))],
        out_specs=[blk_h, blk_st],
        out_shape=[jax.ShapeDtypeStruct((N, Co, L), bf16),
                   jax.ShapeDtypeStruct((G, Co, 2), f32)],
        compiler_params=cparams,
    )(x, w1s, b1c)

    cnt = jnp.float32(N * L)

    def bn_affine(st, gamma, beta):
        # Global biased stats from the per-tile partials (tiny O(C) work in f32).
        mean = jnp.sum(st[:, :, 0], axis=0) / cnt
        var = jnp.maximum(jnp.sum(st[:, :, 1], axis=0) / cnt - mean * mean, 0.0)
        gp = jnp.zeros((Co,), f32).at[:gamma.shape[0]].set(gamma.astype(f32))
        bp = jnp.zeros((Co,), f32).at[:beta.shape[0]].set(beta.astype(f32))
        scale = gp * lax.rsqrt(var + _EPS)
        shift = bp - mean * scale
        return scale.reshape(Co, 1), shift.reshape(Co, 1)

    sc1, sh1 = bn_affine(st1, g1, bt1)

    # -------- pass 2: BN1 + ReLU + conv2 + partial BN2 stats --------
    h2, st2 = pl.pallas_call(
        _conv2_kernel,
        grid=(G,),
        in_specs=[blk_h, rep((Co, 1)), rep((Co, 1)),
                  rep((Co, 3 * Co)), rep((Co, 1))],
        out_specs=[blk_h, blk_st],
        out_shape=[jax.ShapeDtypeStruct((N, Co, L), bf16),
                   jax.ShapeDtypeStruct((G, Co, 2), f32)],
        compiler_params=cparams,
    )(h1, sc1, sh1, w2s, b2c)

    sc2, sh2 = bn_affine(st2, g2, bt2)

    # -------- pass 3: BN2 + recomputed 1x1 residual + add + ReLU --------
    out = pl.pallas_call(
        _bn_add_relu_kernel,
        grid=(G,),
        in_specs=[blk_h, blk_x, rep((Co, Ci)), rep((Co, 1)),
                  rep((Co, 1)), rep((Co, 1))],
        out_specs=blk_h,
        out_shape=jax.ShapeDtypeStruct((N, Co, L), f32),
        compiler_params=cparams,
    )(h2, x, wrp, brc, sc2, sh2)

    return out[:, :Cout, :]


def reference(x, params):
    """Pure-JAX f32 reference mirroring the PyTorch forward (training-mode BN)."""
    (w1, b1, g1, bt1, w2, b2, g2, bt2, wr, br) = params

    def conv(x, w, b, pad):
        y = lax.conv_general_dilated(x, w, (1,), [(pad, pad)],
                                     dimension_numbers=('NCH', 'OIH', 'NCH'))
        return y + b[None, :, None]

    def bn(x, g, bt):
        mean = jnp.mean(x, axis=(0, 2), keepdims=True)
        var = jnp.mean((x - mean) ** 2, axis=(0, 2), keepdims=True)
        return (x - mean) / jnp.sqrt(var + _EPS) * g[None, :, None] + bt[None, :, None]

    res = conv(x, wr[:, :, None], br, 0)
    h = jax.nn.relu(bn(conv(x, w1, b1, 1), g1, bt1))
    h = bn(conv(h, w2, b2, 1), g2, bt2)
    return jax.nn.relu(h + res)


if __name__ == "__main__":
    N, Cin, Cout, L = 2, 4, 8, 16

    key = jax.random.PRNGKey(0)
    ks = jax.random.split(key, 8)
    x = jax.random.normal(ks[0], (N, Cin, L), jnp.float32)

    def u(k, shape, fan_in):
        bound = 1.0 / jnp.sqrt(jnp.float32(fan_in))
        return jax.random.uniform(k, shape, jnp.float32, -bound, bound)

    # conv1: (Cout, Cin, 3); conv2: (Cout, Cout, 3); residual 1x1: (Cout, Cin)
    w1 = u(ks[1], (Cout, Cin, 3), Cin * 3)
    b1 = u(ks[2], (Cout,), Cin * 3)
    w2 = u(ks[3], (Cout, Cout, 3), Cout * 3)
    b2 = u(ks[4], (Cout,), Cout * 3)
    wr = u(ks[5], (Cout, Cin), Cin)
    br = u(ks[6], (Cout,), Cin)
    # BatchNorm affine params at their __init__ defaults.
    g1 = jnp.ones((Cout,), jnp.float32)
    bt1 = jnp.zeros((Cout,), jnp.float32)
    g2 = jnp.ones((Cout,), jnp.float32)
    bt2 = jnp.zeros((Cout,), jnp.float32)

    params = (w1, b1, g1, bt1, w2, b2, g2, bt2, wr, br)

    out = jax.block_until_ready(residual_block(x, params))
    ref = jax.block_until_ready(reference(x, params))

    assert out.shape == (N, Cout, L), out.shape
    err = float(jnp.max(jnp.abs(out - ref)))
    # bf16 inter-pass intermediates / MXU operands -> slightly looser tolerance.
    assert jnp.allclose(out, ref, atol=3e-2, rtol=3e-2), err
    print("KERNEL_OK")
</pallas_src>

<mosaic_0001>
module attributes {stable_mosaic.version = 11 : i64} {
  func.func @_conv2_kernel(%arg0: i32, %arg1: memref<2x8x16xbf16, #tpu.memory_space<vmem>>, %arg2: memref<8x1xf32, #tpu.memory_space<vmem>>, %arg3: memref<8x1xf32, #tpu.memory_space<vmem>>, %arg4: memref<8x24xbf16, #tpu.memory_space<vmem>>, %arg5: memref<8x1xf32, #tpu.memory_space<vmem>>, %arg6: memref<2x8x16xbf16, #tpu.memory_space<vmem>>, %arg7: memref<1x8x2xf32, #tpu.memory_space<vmem>>) attributes {dimension_semantics = [#tpu.dimension_semantics<parallel>], iteration_bounds = array<i64: 1>, scalar_prefetch = 0 : i64, scratch_operands = 0 : i64, tpu.core_type = #tpu.core_type<tc>, window_params = [{transform_indices = @transform_0, window_bounds = array<i64: 2, 8, 16>}, {pipeline_mode = #tpu.pipeline_mode<synchronous>, transform_indices = @transform_1, window_bounds = array<i64: 8, 1>}, {pipeline_mode = #tpu.pipeline_mode<synchronous>, transform_indices = @transform_2, window_bounds = array<i64: 8, 1>}, {pipeline_mode = #tpu.pipeline_mode<synchronous>, transform_indices = @transform_3, window_bounds = array<i64: 8, 24>}, {pipeline_mode = #tpu.pipeline_mode<synchronous>, transform_indices = @transform_4, window_bounds = array<i64: 8, 1>}, {transform_indices = @transform_5, window_bounds = array<i64: 2, 8, 16>}, {transform_indices = @transform_6, window_bounds = array<i64: 1, 8, 2>}]} {
    %0 = tpu.iota {dimensions = array<i32: 1>} : vector<8x16xi32>
    %c0_i32 = arith.constant 0 : i32
    %1 = vector.broadcast %c0_i32 : i32 to vector<8x16xi32>
    %2 = arith.cmpi ne, %0, %1 : vector<8x16xi32>
    %3 = arith.extui %2 : vector<8x16xi1> to vector<8x16xi32>
    %4 = arith.sitofp %3 : vector<8x16xi32> to vector<8x16xf32>
    %c15_i32 = arith.constant 15 : i32
    %5 = vector.broadcast %c15_i32 : i32 to vector<8x16xi32>
    %6 = arith.cmpi ne, %0, %5 : vector<8x16xi32>
    %7 = arith.extui %6 : vector<8x16xi1> to vector<8x16xi32>
    %8 = arith.sitofp %7 : vector<8x16xi32> to vector<8x16xf32>
    %cst = arith.constant 0.000000e+00 : f32
    %9 = vector.broadcast %cst : f32 to vector<8x1xf32>
    %cst_0 = arith.constant 0.000000e+00 : f32
    %10 = vector.broadcast %cst_0 : f32 to vector<8x1xf32>
    %c0 = arith.constant 0 : index
    %c0_1 = arith.constant 0 : index
    %c0_2 = arith.constant 0 : index
    %11 = vector.load %arg1[%c0, %c0_1, %c0_2] : memref<2x8x16xbf16, #tpu.memory_space<vmem>>, vector<1x8x16xbf16>
    %12 = vector.shape_cast %11 : vector<1x8x16xbf16> to vector<8x16xbf16>
    %13 = arith.extf %12 : vector<8x16xbf16> to vector<8x16xf32>
    %c0_3 = arith.constant 0 : index
    %c0_4 = arith.constant 0 : index
    %14 = vector.load %arg2[%c0_3, %c0_4] : memref<8x1xf32, #tpu.memory_space<vmem>>, vector<8x1xf32>
    %15 = vector.broadcast %14 : vector<8x1xf32> to vector<8x16xf32>
    %16 = arith.mulf %13, %15 : vector<8x16xf32>
    %c0_5 = arith.constant 0 : index
    %c0_6 = arith.constant 0 : index
    %17 = vector.load %arg3[%c0_5, %c0_6] : memref<8x1xf32, #tpu.memory_space<vmem>>, vector<8x1xf32>
    %18 = vector.broadcast %17 : vector<8x1xf32> to vector<8x16xf32>
    %19 = arith.addf %16, %18 : vector<8x16xf32>
    %cst_7 = arith.constant 0.000000e+00 : f32
    %20 = vector.broadcast %cst_7 : f32 to vector<8x16xf32>
    %21 = arith.maximumf %19, %20 : vector<8x16xf32>
    %c1_i32 = arith.constant 1 : i32
    %22 = tpu.dynamic_rotate %21 by %c1_i32 dim 1 : vector<8x16xf32>, i32 -> vector<8x16xf32>
    %23 = arith.mulf %22, %4 : vector<8x16xf32>
    %c15_i32_8 = arith.constant 15 : i32
    %24 = tpu.dynamic_rotate %21 by %c15_i32_8 dim 1 : vector<8x16xf32>, i32 -> vector<8x16xf32>
    %25 = arith.mulf %24, %8 : vector<8x16xf32>
    %26 = tpu.concatenate %23, %21, %25 in 0 : vector<8x16xf32>, vector<8x16xf32>, vector<8x16xf32> -> vector<24x16xf32>
    %27 = arith.truncf %26 : vector<24x16xf32> to vector<24x16xbf16>
    %c0_9 = arith.constant 0 : index
    %c0_10 = arith.constant 0 : index
    %28 = vector.load %arg4[%c0_9, %c0_10] : memref<8x24xbf16, #tpu.memory_space<vmem>>, vector<8x24xbf16>
    %cst_11 = arith.constant dense<0.000000e+00> : vector<8x16xf32>
    %29 = tpu.matmul %28, %27, %cst_11 {dimension_numbers = #tpu.dot_dimension_numbers<[1], [0], [0], [1], [0, 0, 1, 1], [], []>} : vector<8x24xbf16>, vector<24x16xbf16>, vector<8x16xf32> -> vector<8x16xf32>
    %c0_12 = arith.constant 0 : index
    %c0_13 = arith.constant 0 : index
    %30 = vector.load %arg5[%c0_12, %c0_13] : memref<8x1xf32, #tpu.memory_space<vmem>>, vector<8x1xf32>
    %31 = vector.broadcast %30 : vector<8x1xf32> to vector<8x16xf32>
    %32 = arith.addf %29, %31 : vector<8x16xf32>
    %33 = arith.truncf %32 : vector<8x16xf32> to vector<8x16xbf16>
    %c0_14 = arith.constant 0 : index
    %c0_15 = arith.constant 0 : index
    %c0_16 = arith.constant 0 : index
    %34 = vector.load %arg6[%c0_14, %c0_15, %c0_16] : memref<2x8x16xbf16, #tpu.memory_space<vmem>>, vector<1x8x16xbf16>
    %35 = vector.shape_cast %34 : vector<1x8x16xbf16> to vector<8x16xbf16>
    %36 = vector.shape_cast %33 : vector<8x16xbf16> to vector<1x8x16xbf16>
    tpu.vector_store %arg6[%c0_14, %c0_15, %c0_16], %36 {strides = array<i32>} : memref<2x8x16xbf16, #tpu.memory_space<vmem>>, vector<1x8x16xbf16>,
    %cst_17 = arith.constant dense<0.000000e+00> : vector<8xf32>
    %37 = vector.multi_reduction <add>, %32, %cst_17 [1] : vector<8x16xf32> to vector<8xf32>
    %38 = vector.shape_cast %37 : vector<8xf32> to vector<8x1xf32>
    %39 = arith.addf %9, %38 : vector<8x1xf32>
    %40 = arith.mulf %32, %32 : vector<8x16xf32>
    %cst_18 = arith.constant dense<0.000000e+00> : vector<8xf32>
    %41 = vector.multi_reduction <add>, %40, %cst_18 [1] : vector<8x16xf32> to vector<8xf32>
    %42 = vector.shape_cast %41 : vector<8xf32> to vector<8x1xf32>
    %43 = arith.addf %10, %42 : vector<8x1xf32>
    %c1 = arith.constant 1 : index
    %c0_19 = arith.constant 0 : index
    %c0_20 = arith.constant 0 : index
    %44 = vector.load %arg1[%c1, %c0_19, %c0_20] : memref<2x8x16xbf16, #tpu.memory_space<vmem>>, vector<1x8x16xbf16>
    %45 = vector.shape_cast %44 : vector<1x8x16xbf16> to vector<8x16xbf16>
    %46 = arith.extf %45 : vector<8x16xbf16> to vector<8x16xf32>
    %c0_21 = arith.constant 0 : index
    %c0_22 = arith.constant 0 : index
    %47 = vector.load %arg2[%c0_21, %c0_22] : memref<8x1xf32, #tpu.memory_space<vmem>>, vector<8x1xf32>
    %48 = vector.broadcast %47 : vector<8x1xf32> to vector<8x16xf32>
    %49 = arith.mulf %46, %48 : vector<8x16xf32>
    %c0_23 = arith.constant 0 : index
    %c0_24 = arith.constant 0 : index
    %50 = vector.load %arg3[%c0_23, %c0_24] : memref<8x1xf32, #tpu.memory_space<vmem>>, vector<8x1xf32>
    %51 = vector.broadcast %50 : vector<8x1xf32> to vector<8x16xf32>
    %52 = arith.addf %49, %51 : vector<8x16xf32>
    %cst_25 = arith.constant 0.000000e+00 : f32
    %53 = vector.broadcast %cst_25 : f32 to vector<8x16xf32>
    %54 = arith.maximumf %52, %53 : vector<8x16xf32>
    %c1_i32_26 = arith.constant 1 : i32
    %55 = tpu.dynamic_rotate %54 by %c1_i32_26 dim 1 : vector<8x16xf32>, i32 -> vector<8x16xf32>
    %56 = arith.mulf %55, %4 : vector<8x16xf32>
    %c15_i32_27 = arith.constant 15 : i32
    %57 = tpu.dynamic_rotate %54 by %c15_i32_27 dim 1 : vector<8x16xf32>, i32 -> vector<8x16xf32>
    %58 = arith.mulf %57, %8 : vector<8x16xf32>
    %59 = tpu.concatenate %56, %54, %58 in 0 : vector<8x16xf32>, vector<8x16xf32>, vector<8x16xf32> -> vector<24x16xf32>
    %60 = arith.truncf %59 : vector<24x16xf32> to vector<24x16xbf16>
    %c0_28 = arith.constant 0 : index
    %c0_29 = arith.constant 0 : index
    %61 = vector.load %arg4[%c0_28, %c0_29] : memref<8x24xbf16, #tpu.memory_space<vmem>>, vector<8x24xbf16>
    %cst_30 = arith.constant dense<0.000000e+00> : vector<8x16xf32>
    %62 = tpu.matmul %61, %60, %cst_30 {dimension_numbers = #tpu.dot_dimension_numbers<[1], [0], [0], [1], [0, 0, 1, 1], [], []>} : vector<8x24xbf16>, vector<24x16xbf16>, vector<8x16xf32> -> vector<8x16xf32>
    %c0_31 = arith.constant 0 : index
    %c0_32 = arith.constant 0 : index
    %63 = vector.load %arg5[%c0_31, %c0_32] : memref<8x1xf32, #tpu.memory_space<vmem>>, vector<8x1xf32>
    %64 = vector.broadcast %63 : vector<8x1xf32> to vector<8x16xf32>
    %65 = arith.addf %62, %64 : vector<8x16xf32>
    %66 = arith.truncf %65 : vector<8x16xf32> to vector<8x16xbf16>
    %c1_33 = arith.constant 1 : index
    %c0_34 = arith.constant 0 : index
    %c0_35 = arith.constant 0 : index
    %67 = vector.load %arg6[%c1_33, %c0_34, %c0_35] : memref<2x8x16xbf16, #tpu.memory_space<vmem>>, vector<1x8x16xbf16>
    %68 = vector.shape_cast %67 : vector<1x8x16xbf16> to vector<8x16xbf16>
    %69 = vector.shape_cast %66 : vector<8x16xbf16> to vector<1x8x16xbf16>
    tpu.vector_store %arg6[%c1_33, %c0_34, %c0_35], %69 {strides = array<i32>} : memref<2x8x16xbf16, #tpu.memory_space<vmem>>, vector<1x8x16xbf16>,
    %cst_36 = arith.constant dense<0.000000e+00> : vector<8xf32>
    %70 = vector.multi_reduction <add>, %65, %cst_36 [1] : vector<8x16xf32> to vector<8xf32>
    %71 = vector.shape_cast %70 : vector<8xf32> to vector<8x1xf32>
    %72 = arith.addf %39, %71 : vector<8x1xf32>
    %73 = arith.mulf %65, %65 : vector<8x16xf32>
    %cst_37 = arith.constant dense<0.000000e+00> : vector<8xf32>
    %74 = vector.multi_reduction <add>, %73, %cst_37 [1] : vector<8x16xf32> to vector<8xf32>
    %75 = vector.shape_cast %74 : vector<8xf32> to vector<8x1xf32>
    %76 = arith.addf %43, %75 : vector<8x1xf32>
    %77 = tpu.concatenate %72, %76 in 1 : vector<8x1xf32>, vector<8x1xf32> -> vector<8x2xf32>
    %c0_38 = arith.constant 0 : index
    %c0_39 = arith.constant 0 : index
    %c0_40 = arith.constant 0 : index
    %78 = vector.load %arg7[%c0_38, %c0_39, %c0_40] : memref<1x8x2xf32, #tpu.memory_space<vmem>>, vector<1x8x2xf32>
    %79 = vector.shape_cast %78 : vector<1x8x2xf32> to vector<8x2xf32>
    %80 = vector.shape_cast %77 : vector<8x2xf32> to vector<1x8x2xf32>
    tpu.vector_store %arg7[%c0_38, %c0_39, %c0_40], %80 {strides = array<i32>} : memref<1x8x2xf32, #tpu.memory_space<vmem>>, vector<1x8x2xf32>,
    return
  }
  func.func @transform_0(%arg0: i32) -> (i32, i32, i32) {
    %c0_i32 = arith.constant 0 : i32
    %c0_i32_0 = arith.constant 0 : i32
    %c0_i32_1 = arith.constant 0 : i32
    return %arg0, %c0_i32, %c0_i32_0 : i32, i32, i32
  }
  func.func @transform_1(%arg0: i32) -> (i32, i32) {
    %c0_i32 = arith.constant 0 : i32
    %c0_i32_0 = arith.constant 0 : i32
    %c0_i32_1 = arith.constant 0 : i32
    return %c0_i32, %c0_i32_0 : i32, i32
  }
  func.func @transform_2(%arg0: i32) -> (i32, i32) {
    %c0_i32 = arith.constant 0 : i32
    %c0_i32_0 = arith.constant 0 : i32
    %c0_i32_1 = arith.constant 0 : i32
    return %c0_i32, %c0_i32_0 : i32, i32
  }
  func.func @transform_3(%arg0: i32) -> (i32, i32) {
    %c0_i32 = arith.constant 0 : i32
    %c0_i32_0 = arith.constant 0 : i32
    %c0_i32_1 = arith.constant 0 : i32
    return %c0_i32, %c0_i32_0 : i32, i32
  }
  func.func @transform_4(%arg0: i32) -> (i32, i32) {
    %c0_i32 = arith.constant 0 : i32
    %c0_i32_0 = arith.constant 0 : i32
    %c0_i32_1 = arith.constant 0 : i32
    return %c0_i32, %c0_i32_0 : i32, i32
  }
  func.func @transform_5(%arg0: i32) -> (i32, i32, i32) {
    %c0_i32 = arith.constant 0 : i32
    %c0_i32_0 = arith.constant 0 : i32
    %c0_i32_1 = arith.constant 0 : i32
    return %arg0, %c0_i32, %c0_i32_0 : i32, i32, i32
  }
  func.func @transform_6(%arg0: i32) -> (i32, i32, i32) {
    %c0_i32 = arith.constant 0 : i32
    %c0_i32_0 = arith.constant 0 : i32
    %c0_i32_1 = arith.constant 0 : i32
    return %arg0, %c0_i32, %c0_i32_0 : i32, i32, i32
  }
}

module attributes {stable_mosaic.version = 11 : i64} {
  func.func @_conv1_kernel(%arg0: i32, %arg1: memref<2x8x16xf32, #tpu.memory_space<vmem>>, %arg2: memref<8x24xbf16, #tpu.memory_space<vmem>>, %arg3: memref<8x1xf32, #tpu.memory_space<vmem>>, %arg4: memref<2x8x16xbf16, #tpu.memory_space<vmem>>, %arg5: memref<1x8x2xf32, #tpu.memory_space<vmem>>) attributes {dimension_semantics = [#tpu.dimension_semantics<parallel>], iteration_bounds = array<i64: 1>, scalar_prefetch = 0 : i64, scratch_operands = 0 : i64, tpu.core_type = #tpu.core_type<tc>, window_params = [{transform_indices = @transform_0, window_bounds = array<i64: 2, 8, 16>}, {pipeline_mode = #tpu.pipeline_mode<synchronous>, transform_indices = @transform_1, window_bounds = array<i64: 8, 24>}, {pipeline_mode = #tpu.pipeline_mode<synchronous>, transform_indices = @transform_2, window_bounds = array<i64: 8, 1>}, {transform_indices = @transform_3, window_bounds = array<i64: 2, 8, 16>}, {transform_indices = @transform_4, window_bounds = array<i64: 1, 8, 2>}]} {
    %0 = tpu.iota {dimensions = array<i32: 1>} : vector<8x16xi32>
    %c0_i32 = arith.constant 0 : i32
    %1 = vector.broadcast %c0_i32 : i32 to vector<8x16xi32>
    %2 = arith.cmpi ne, %0, %1 : vector<8x16xi32>
    %3 = arith.extui %2 : vector<8x16xi1> to vector<8x16xi32>
    %4 = arith.sitofp %3 : vector<8x16xi32> to vector<8x16xf32>
    %c15_i32 = arith.constant 15 : i32
    %5 = vector.broadcast %c15_i32 : i32 to vector<8x16xi32>
    %6 = arith.cmpi ne, %0, %5 : vector<8x16xi32>
    %7 = arith.extui %6 : vector<8x16xi1> to vector<8x16xi32>
    %8 = arith.sitofp %7 : vector<8x16xi32> to vector<8x16xf32>
    %cst = arith.constant 0.000000e+00 : f32
    %9 = vector.broadcast %cst : f32 to vector<8x1xf32>
    %cst_0 = arith.constant 0.000000e+00 : f32
    %10 = vector.broadcast %cst_0 : f32 to vector<8x1xf32>
    %c0 = arith.constant 0 : index
    %c0_1 = arith.constant 0 : index
    %c0_2 = arith.constant 0 : index
    %11 = vector.load %arg1[%c0, %c0_1, %c0_2] : memref<2x8x16xf32, #tpu.memory_space<vmem>>, vector<1x8x16xf32>
    %12 = vector.shape_cast %11 : vector<1x8x16xf32> to vector<8x16xf32>
    %c1_i32 = arith.constant 1 : i32
    %13 = tpu.dynamic_rotate %12 by %c1_i32 dim 1 : vector<8x16xf32>, i32 -> vector<8x16xf32>
    %14 = arith.mulf %13, %4 : vector<8x16xf32>
    %c15_i32_3 = arith.constant 15 : i32
    %15 = tpu.dynamic_rotate %12 by %c15_i32_3 dim 1 : vector<8x16xf32>, i32 -> vector<8x16xf32>
    %16 = arith.mulf %15, %8 : vector<8x16xf32>
    %17 = tpu.concatenate %14, %12, %16 in 0 : vector<8x16xf32>, vector<8x16xf32>, vector<8x16xf32> -> vector<24x16xf32>
    %18 = arith.truncf %17 : vector<24x16xf32> to vector<24x16xbf16>
    %c0_4 = arith.constant 0 : index
    %c0_5 = arith.constant 0 : index
    %19 = vector.load %arg2[%c0_4, %c0_5] : memref<8x24xbf16, #tpu.memory_space<vmem>>, vector<8x24xbf16>
    %cst_6 = arith.constant dense<0.000000e+00> : vector<8x16xf32>
    %20 = tpu.matmul %19, %18, %cst_6 {dimension_numbers = #tpu.dot_dimension_numbers<[1], [0], [0], [1], [0, 0, 1, 1], [], []>} : vector<8x24xbf16>, vector<24x16xbf16>, vector<8x16xf32> -> vector<8x16xf32>
    %c0_7 = arith.constant 0 : index
    %c0_8 = arith.constant 0 : index
    %21 = vector.load %arg3[%c0_7, %c0_8] : memref<8x1xf32, #tpu.memory_space<vmem>>, vector<8x1xf32>
    %22 = vector.broadcast %21 : vector<8x1xf32> to vector<8x16xf32>
    %23 = arith.addf %20, %22 : vector<8x16xf32>
    %24 = arith.truncf %23 : vector<8x16xf32> to vector<8x16xbf16>
    %c0_9 = arith.constant 0 : index
    %c0_10 = arith.constant 0 : index
    %c0_11 = arith.constant 0 : index
    %25 = vector.load %arg4[%c0_9, %c0_10, %c0_11] : memref<2x8x16xbf16, #tpu.memory_space<vmem>>, vector<1x8x16xbf16>
    %26 = vector.shape_cast %25 : vector<1x8x16xbf16> to vector<8x16xbf16>
    %27 = vector.shape_cast %24 : vector<8x16xbf16> to vector<1x8x16xbf16>
    tpu.vector_store %arg4[%c0_9, %c0_10, %c0_11], %27 {strides = array<i32>} : memref<2x8x16xbf16, #tpu.memory_space<vmem>>, vector<1x8x16xbf16>,
    %cst_12 = arith.constant dense<0.000000e+00> : vector<8xf32>
    %28 = vector.multi_reduction <add>, %23, %cst_12 [1] : vector<8x16xf32> to vector<8xf32>
    %29 = vector.shape_cast %28 : vector<8xf32> to vector<8x1xf32>
    %30 = arith.addf %9, %29 : vector<8x1xf32>
    %31 = arith.mulf %23, %23 : vector<8x16xf32>
    %cst_13 = arith.constant dense<0.000000e+00> : vector<8xf32>
    %32 = vector.multi_reduction <add>, %31, %cst_13 [1] : vector<8x16xf32> to vector<8xf32>
    %33 = vector.shape_cast %32 : vector<8xf32> to vector<8x1xf32>
    %34 = arith.addf %10, %33 : vector<8x1xf32>
    %c1 = arith.constant 1 : index
    %c0_14 = arith.constant 0 : index
    %c0_15 = arith.constant 0 : index
    %35 = vector.load %arg1[%c1, %c0_14, %c0_15] : memref<2x8x16xf32, #tpu.memory_space<vmem>>, vector<1x8x16xf32>
    %36 = vector.shape_cast %35 : vector<1x8x16xf32> to vector<8x16xf32>
    %c1_i32_16 = arith.constant 1 : i32
    %37 = tpu.dynamic_rotate %36 by %c1_i32_16 dim 1 : vector<8x16xf32>, i32 -> vector<8x16xf32>
    %38 = arith.mulf %37, %4 : vector<8x16xf32>
    %c15_i32_17 = arith.constant 15 : i32
    %39 = tpu.dynamic_rotate %36 by %c15_i32_17 dim 1 : vector<8x16xf32>, i32 -> vector<8x16xf32>
    %40 = arith.mulf %39, %8 : vector<8x16xf32>
    %41 = tpu.concatenate %38, %36, %40 in 0 : vector<8x16xf32>, vector<8x16xf32>, vector<8x16xf32> -> vector<24x16xf32>
    %42 = arith.truncf %41 : vector<24x16xf32> to vector<24x16xbf16>
    %c0_18 = arith.constant 0 : index
    %c0_19 = arith.constant 0 : index
    %43 = vector.load %arg2[%c0_18, %c0_19] : memref<8x24xbf16, #tpu.memory_space<vmem>>, vector<8x24xbf16>
    %cst_20 = arith.constant dense<0.000000e+00> : vector<8x16xf32>
    %44 = tpu.matmul %43, %42, %cst_20 {dimension_numbers = #tpu.dot_dimension_numbers<[1], [0], [0], [1], [0, 0, 1, 1], [], []>} : vector<8x24xbf16>, vector<24x16xbf16>, vector<8x16xf32> -> vector<8x16xf32>
    %c0_21 = arith.constant 0 : index
    %c0_22 = arith.constant 0 : index
    %45 = vector.load %arg3[%c0_21, %c0_22] : memref<8x1xf32, #tpu.memory_space<vmem>>, vector<8x1xf32>
    %46 = vector.broadcast %45 : vector<8x1xf32> to vector<8x16xf32>
    %47 = arith.addf %44, %46 : vector<8x16xf32>
    %48 = arith.truncf %47 : vector<8x16xf32> to vector<8x16xbf16>
    %c1_23 = arith.constant 1 : index
    %c0_24 = arith.constant 0 : index
    %c0_25 = arith.constant 0 : index
    %49 = vector.load %arg4[%c1_23, %c0_24, %c0_25] : memref<2x8x16xbf16, #tpu.memory_space<vmem>>, vector<1x8x16xbf16>
    %50 = vector.shape_cast %49 : vector<1x8x16xbf16> to vector<8x16xbf16>
    %51 = vector.shape_cast %48 : vector<8x16xbf16> to vector<1x8x16xbf16>
    tpu.vector_store %arg4[%c1_23, %c0_24, %c0_25], %51 {strides = array<i32>} : memref<2x8x16xbf16, #tpu.memory_space<vmem>>, vector<1x8x16xbf16>,
    %cst_26 = arith.constant dense<0.000000e+00> : vector<8xf32>
    %52 = vector.multi_reduction <add>, %47, %cst_26 [1] : vector<8x16xf32> to vector<8xf32>
    %53 = vector.shape_cast %52 : vector<8xf32> to vector<8x1xf32>
    %54 = arith.addf %30, %53 : vector<8x1xf32>
    %55 = arith.mulf %47, %47 : vector<8x16xf32>
    %cst_27 = arith.constant dense<0.000000e+00> : vector<8xf32>
    %56 = vector.multi_reduction <add>, %55, %cst_27 [1] : vector<8x16xf32> to vector<8xf32>
    %57 = vector.shape_cast %56 : vector<8xf32> to vector<8x1xf32>
    %58 = arith.addf %34, %57 : vector<8x1xf32>
    %59 = tpu.concatenate %54, %58 in 1 : vector<8x1xf32>, vector<8x1xf32> -> vector<8x2xf32>
    %c0_28 = arith.constant 0 : index
    %c0_29 = arith.constant 0 : index
    %c0_30 = arith.constant 0 : index
    %60 = vector.load %arg5[%c0_28, %c0_29, %c0_30] : memref<1x8x2xf32, #tpu.memory_space<vmem>>, vector<1x8x2xf32>
    %61 = vector.shape_cast %60 : vector<1x8x2xf32> to vector<8x2xf32>
    %62 = vector.shape_cast %59 : vector<8x2xf32> to vector<1x8x2xf32>
    tpu.vector_store %arg5[%c0_28, %c0_29, %c0_30], %62 {strides = array<i32>} : memref<1x8x2xf32, #tpu.memory_space<vmem>>, vector<1x8x2xf32>,
    return
  }
  func.func @transform_0(%arg0: i32) -> (i32, i32, i32) {
    %c0_i32 = arith.constant 0 : i32
    %c0_i32_0 = arith.constant 0 : i32
    %c0_i32_1 = arith.constant 0 : i32
    return %arg0, %c0_i32, %c0_i32_0 : i32, i32, i32
  }
  func.func @transform_1(%arg0: i32) -> (i32, i32) {
    %c0_i32 = arith.constant 0 : i32
    %c0_i32_0 = arith.constant 0 : i32
    %c0_i32_1 = arith.constant 0 : i32
    return %c0_i32, %c0_i32_0 : i32, i32
  }
  func.func @transform_2(%arg0: i32) -> (i32, i32) {
    %c0_i32 = arith.constant 0 : i32
    %c0_i32_0 = arith.constant 0 : i32
    %c0_i32_1 = arith.constant 0 : i32
    return %c0_i32, %c0_i32_0 : i32, i32
  }
  func.func @transform_3(%arg0: i32) -> (i32, i32, i32) {
    %c0_i32 = arith.constant 0 : i32
    %c0_i32_0 = arith.constant 0 : i32
    %c0_i32_1 = arith.constant 0 : i32
    return %arg0, %c0_i32, %c0_i32_0 : i32, i32, i32
  }
  func.func @transform_4(%arg0: i32) -> (i32, i32, i32) {
    %c0_i32 = arith.constant 0 : i32
    %c0_i32_0 = arith.constant 0 : i32
    %c0_i32_1 = arith.constant 0 : i32
    return %arg0, %c0_i32, %c0_i32_0 : i32, i32, i32
  }
}

module attributes {stable_mosaic.version = 11 : i64} {
  func.func @_bn_add_relu_kernel(%arg0: i32, %arg1: memref<2x8x16xbf16, #tpu.memory_space<vmem>>, %arg2: memref<2x8x16xf32, #tpu.memory_space<vmem>>, %arg3: memref<8x8xf32, #tpu.memory_space<vmem>>, %arg4: memref<8x1xf32, #tpu.memory_space<vmem>>, %arg5: memref<8x1xf32, #tpu.memory_space<vmem>>, %arg6: memref<8x1xf32, #tpu.memory_space<vmem>>, %arg7: memref<2x8x16xf32, #tpu.memory_space<vmem>>) attributes {dimension_semantics = [#tpu.dimension_semantics<parallel>], iteration_bounds = array<i64: 1>, scalar_prefetch = 0 : i64, scratch_operands = 0 : i64, tpu.core_type = #tpu.core_type<tc>, window_params = [{transform_indices = @transform_0, window_bounds = array<i64: 2, 8, 16>}, {transform_indices = @transform_1, window_bounds = array<i64: 2, 8, 16>}, {pipeline_mode = #tpu.pipeline_mode<synchronous>, transform_indices = @transform_2, window_bounds = array<i64: 8, 8>}, {pipeline_mode = #tpu.pipeline_mode<synchronous>, transform_indices = @transform_3, window_bounds = array<i64: 8, 1>}, {pipeline_mode = #tpu.pipeline_mode<synchronous>, transform_indices = @transform_4, window_bounds = array<i64: 8, 1>}, {pipeline_mode = #tpu.pipeline_mode<synchronous>, transform_indices = @transform_5, window_bounds = array<i64: 8, 1>}, {transform_indices = @transform_6, window_bounds = array<i64: 2, 8, 16>}]} {
    %c0 = arith.constant 0 : index
    %c0_0 = arith.constant 0 : index
    %0 = vector.load %arg3[%c0, %c0_0] : memref<8x8xf32, #tpu.memory_space<vmem>>, vector<8x8xf32>
    %c0_1 = arith.constant 0 : index
    %c0_2 = arith.constant 0 : index
    %c0_3 = arith.constant 0 : index
    %1 = vector.load %arg2[%c0_1, %c0_2, %c0_3] : memref<2x8x16xf32, #tpu.memory_space<vmem>>, vector<1x8x16xf32>
    %2 = vector.shape_cast %1 : vector<1x8x16xf32> to vector<8x16xf32>
    %cst = arith.constant dense<0.000000e+00> : vector<8x16xf32>
    %3 = tpu.matmul %0, %2, %cst {dimension_numbers = #tpu.dot_dimension_numbers<[1], [0], [0], [1], [0, 0, 1, 1], [], []>} : vector<8x8xf32>, vector<8x16xf32>, vector<8x16xf32> -> vector<8x16xf32>
    %c0_4 = arith.constant 0 : index
    %c0_5 = arith.constant 0 : index
    %4 = vector.load %arg4[%c0_4, %c0_5] : memref<8x1xf32, #tpu.memory_space<vmem>>, vector<8x1xf32>
    %5 = vector.broadcast %4 : vector<8x1xf32> to vector<8x16xf32>
    %6 = arith.addf %3, %5 : vector<8x16xf32>
    %c0_6 = arith.constant 0 : index
    %c0_7 = arith.constant 0 : index
    %c0_8 = arith.constant 0 : index
    %7 = vector.load %arg1[%c0_6, %c0_7, %c0_8] : memref<2x8x16xbf16, #tpu.memory_space<vmem>>, vector<1x8x16xbf16>
    %8 = vector.shape_cast %7 : vector<1x8x16xbf16> to vector<8x16xbf16>
    %9 = arith.extf %8 : vector<8x16xbf16> to vector<8x16xf32>
    %c0_9 = arith.constant 0 : index
    %c0_10 = arith.constant 0 : index
    %10 = vector.load %arg5[%c0_9, %c0_10] : memref<8x1xf32, #tpu.memory_space<vmem>>, vector<8x1xf32>
    %11 = vector.broadcast %10 : vector<8x1xf32> to vector<8x16xf32>
    %12 = arith.mulf %9, %11 : vector<8x16xf32>
    %c0_11 = arith.constant 0 : index
    %c0_12 = arith.constant 0 : index
    %13 = vector.load %arg6[%c0_11, %c0_12] : memref<8x1xf32, #tpu.memory_space<vmem>>, vector<8x1xf32>
    %14 = vector.broadcast %13 : vector<8x1xf32> to vector<8x16xf32>
    %15 = arith.addf %12, %14 : vector<8x16xf32>
    %16 = arith.addf %15, %6 : vector<8x16xf32>
    %cst_13 = arith.constant 0.000000e+00 : f32
    %17 = vector.broadcast %cst_13 : f32 to vector<8x16xf32>
    %18 = arith.maximumf %16, %17 : vector<8x16xf32>
    %c0_14 = arith.constant 0 : index
    %c0_15 = arith.constant 0 : index
    %c0_16 = arith.constant 0 : index
    %19 = vector.load %arg7[%c0_14, %c0_15, %c0_16] : memref<2x8x16xf32, #tpu.memory_space<vmem>>, vector<1x8x16xf32>
    %20 = vector.shape_cast %19 : vector<1x8x16xf32> to vector<8x16xf32>
    %21 = vector.shape_cast %18 : vector<8x16xf32> to vector<1x8x16xf32>
    tpu.vector_store %arg7[%c0_14, %c0_15, %c0_16], %21 {strides = array<i32>} : memref<2x8x16xf32, #tpu.memory_space<vmem>>, vector<1x8x16xf32>,
    %c0_17 = arith.constant 0 : index
    %c0_18 = arith.constant 0 : index
    %22 = vector.load %arg3[%c0_17, %c0_18] : memref<8x8xf32, #tpu.memory_space<vmem>>, vector<8x8xf32>
    %c1 = arith.constant 1 : index
    %c0_19 = arith.constant 0 : index
    %c0_20 = arith.constant 0 : index
    %23 = vector.load %arg2[%c1, %c0_19, %c0_20] : memref<2x8x16xf32, #tpu.memory_space<vmem>>, vector<1x8x16xf32>
    %24 = vector.shape_cast %23 : vector<1x8x16xf32> to vector<8x16xf32>
    %cst_21 = arith.constant dense<0.000000e+00> : vector<8x16xf32>
    %25 = tpu.matmul %22, %24, %cst_21 {dimension_numbers = #tpu.dot_dimension_numbers<[1], [0], [0], [1], [0, 0, 1, 1], [], []>} : vector<8x8xf32>, vector<8x16xf32>, vector<8x16xf32> -> vector<8x16xf32>
    %c0_22 = arith.constant 0 : index
    %c0_23 = arith.constant 0 : index
    %26 = vector.load %arg4[%c0_22, %c0_23] : memref<8x1xf32, #tpu.memory_space<vmem>>, vector<8x1xf32>
    %27 = vector.broadcast %26 : vector<8x1xf32> to vector<8x16xf32>
    %28 = arith.addf %25, %27 : vector<8x16xf32>
    %c1_24 = arith.constant 1 : index
    %c0_25 = arith.constant 0 : index
    %c0_26 = arith.constant 0 : index
    %29 = vector.load %arg1[%c1_24, %c0_25, %c0_26] : memref<2x8x16xbf16, #tpu.memory_space<vmem>>, vector<1x8x16xbf16>
    %30 = vector.shape_cast %29 : vector<1x8x16xbf16> to vector<8x16xbf16>
    %31 = arith.extf %30 : vector<8x16xbf16> to vector<8x16xf32>
    %c0_27 = arith.constant 0 : index
    %c0_28 = arith.constant 0 : index
    %32 = vector.load %arg5[%c0_27, %c0_28] : memref<8x1xf32, #tpu.memory_space<vmem>>, vector<8x1xf32>
    %33 = vector.broadcast %32 : vector<8x1xf32> to vector<8x16xf32>
    %34 = arith.mulf %31, %33 : vector<8x16xf32>
    %c0_29 = arith.constant 0 : index
    %c0_30 = arith.constant 0 : index
    %35 = vector.load %arg6[%c0_29, %c0_30] : memref<8x1xf32, #tpu.memory_space<vmem>>, vector<8x1xf32>
    %36 = vector.broadcast %35 : vector<8x1xf32> to vector<8x16xf32>
    %37 = arith.addf %34, %36 : vector<8x16xf32>
    %38 = arith.addf %37, %28 : vector<8x16xf32>
    %cst_31 = arith.constant 0.000000e+00 : f32
    %39 = vector.broadcast %cst_31 : f32 to vector<8x16xf32>
    %40 = arith.maximumf %38, %39 : vector<8x16xf32>
    %c1_32 = arith.constant 1 : index
    %c0_33 = arith.constant 0 : index
    %c0_34 = arith.constant 0 : index
    %41 = vector.load %arg7[%c1_32, %c0_33, %c0_34] : memref<2x8x16xf32, #tpu.memory_space<vmem>>, vector<1x8x16xf32>
    %42 = vector.shape_cast %41 : vector<1x8x16xf32> to vector<8x16xf32>
    %43 = vector.shape_cast %40 : vector<8x16xf32> to vector<1x8x16xf32>
    tpu.vector_store %arg7[%c1_32, %c0_33, %c0_34], %43 {strides = array<i32>} : memref<2x8x16xf32, #tpu.memory_space<vmem>>, vector<1x8x16xf32>,
    return
  }
  func.func @transform_0(%arg0: i32) -> (i32, i32, i32) {
    %c0_i32 = arith.constant 0 : i32
    %c0_i32_0 = arith.constant 0 : i32
    %c0_i32_1 = arith.constant 0 : i32
    return %arg0, %c0_i32, %c0_i32_0 : i32, i32, i32
  }
  func.func @transform_1(%arg0: i32) -> (i32, i32, i32) {
    %c0_i32 = arith.constant 0 : i32
    %c0_i32_0 = arith.constant 0 : i32
    %c0_i32_1 = arith.constant 0 : i32
    return %arg0, %c0_i32, %c0_i32_0 : i32, i32, i32
  }
  func.func @transform_2(%arg0: i32) -> (i32, i32) {
    %c0_i32 = arith.constant 0 : i32
    %c0_i32_0 = arith.constant 0 : i32
    %c0_i32_1 = arith.constant 0 : i32
    return %c0_i32, %c0_i32_0 : i32, i32
  }
  func.func @transform_3(%arg0: i32) -> (i32, i32) {
    %c0_i32 = arith.constant 0 : i32
    %c0_i32_0 = arith.constant 0 : i32
    %c0_i32_1 = arith.constant 0 : i32
    return %c0_i32, %c0_i32_0 : i32, i32
  }
  func.func @transform_4(%arg0: i32) -> (i32, i32) {
    %c0_i32 = arith.constant 0 : i32
    %c0_i32_0 = arith.constant 0 : i32
    %c0_i32_1 = arith.constant 0 : i32
    return %c0_i32, %c0_i32_0 : i32, i32
  }
  func.func @transform_5(%arg0: i32) -> (i32, i32) {
    %c0_i32 = arith.constant 0 : i32
    %c0_i32_0 = arith.constant 0 : i32
    %c0_i32_1 = arith.constant 0 : i32
    return %c0_i32, %c0_i32_0 : i32, i32
  }
  func.func @transform_6(%arg0: i32) -> (i32, i32, i32) {
    %c0_i32 = arith.constant 0 : i32
    %c0_i32_0 = arith.constant 0 : i32
    %c0_i32_1 = arith.constant 0 : i32
    return %arg0, %c0_i32, %c0_i32_0 : i32, i32, i32
  }
}

</mosaic_0001>

<bundles_post_ra>
// kernel: residual_block.3
= control target key start
LH: loop header
LB: loop body
LE: loop exit
PB: predicated region body
PF: predicated region fallthrough
CT: control target
= control target key end

     0   :  { %v17_v0 = vlaneseq  ;;  %v280_v2 = vmov 0.0   ;;  %s281_s17 = smov 16   ;;  %s282_s20 = smov 1   ;;  %vm26_vm2 = vcmask 1047680   ;;  %vm285_vm3 = vmmov 0   ;;  %s349_s0 = inlined_call_operand.vmem [shape: f32[2,8,16], index: 0, kind: input, shape index: {}]   ;;  %s350_s2 = inlined_call_operand.vmem [shape: f32[8,1], index: 2, kind: input, shape index: {}]   ;;  %s351_s1 = inlined_call_operand.vmem [shape: bf16[8,24], index: 1, kind: input, shape index: {}]   ;;  %s352_s3 = inlined_call_operand.vmem [shape: bf16[2,8,16], index: 3, kind: output, shape index: {0}]   ;;  %s353_s4 = inlined_call_operand.vmem [shape: f32[1,8,2], index: 4, kind: output, shape index: {1}]  }
   0x1   :  { %v25_v1 = vld [vmem:[%s349_s0] sm:$0xff]  ;;  %244 = vmatprep.subr.bf16.mxu0 %v280_v2  ;;  %252 = vmatprep.subr.bf16.mxu1 %v280_v2  ;;  %v235_v4 = vld [vmem:[%s349_s0 + $0x8] sm:$0xff]  ;;  %s283_s21 = smov 15   ;;  %s284_s0 = smov 14   ;;  %v286_v25 = vmov 0   ;;  %vm71_vm4 = vcmask 1043456  }
   0x2   :  { %27 = vrot.lane.b32.xlu0 %v25_v1, %s281_s17  ;;  %v18_v3 = vand.u32 127, %v17_v0  ;;  %248 = vmatprep.mubr.msk.bf16.mxu0 %vm285_vm3, %v280_v2  ;;  %s287_s22 = smov 113   ;;  %v54_v34 = vld [vmem:[%s350_s2] sm:$0xff]  ;;  %vm67_vm5 = vcmask 195584   ;;  %vm118_vm6 = vcmask 130048   ;;  %vm116_vm7 = vcmask 125952  }
   0x3   :  { %256 = vmatprep.mubr.msk.bf16.mxu1 %vm285_vm3, %v280_v2  ;;  %278 = vset.pattern.permute.xlu0 %v286_v25  ;;  %v53_v41 = vld [vmem:[%s351_s1] sm:$0xf]  ;;  %vm220_vm8 = vcmask 7168   ;;  %vm222_vm9 = vcmask 15360  }
   0x4   :  { %vm22_vm0 = vcmp.ne.s32.totalorder %v18_v3, 15  ;;  %vm19_vm1 = vcmp.ne.s32.totalorder %v18_v3, 0  ;;  %279 = vset.pattern.permute.xlu1 %v286_v25  ;;  %v148_v42 = vld [vmem:[%s351_s1] sm:$0xf] }
   0x5   :  { %v233_v5 = vsel %vm22_vm0, 1.0, %v280_v2  ;;  %v232_v6 = vsel %vm19_vm1, 1.0, %v280_v2 }
   0x6   :  { %130 = vrot.lane.b32.xlu0 %v235_v4, %s281_s17  ;;  %v273_v7 = vpack.i.bf16 %v25_v1, %v232_v6 }
   0xa   :  { %39 = vrot.lane.b32.xlu0 %v233_v5, %s282_s20 }
   0xe   :  { %274 = vrot.lane.b32.xlu0 %v273_v7, %s283_s21 }
  0x74   :  { %v28_v8 = vpop.permute.xlu0 %27 }
  0x75   :  { %v29_v9 = vsel %vm26_vm2, %v28_v8, %v25_v1 }
  0x76   :  { %30 = vrot.lane.b32.xlu1 %v29_v9, %s281_s17 }
  0x78   :  { %v131_v10 = vpop.permute.xlu0 %130 }
  0x79   :  { %v132_v11 = vsel %vm26_vm2, %v131_v10, %v235_v4 }
  0x7a   :  { %133 = vrot.lane.b32.xlu1 %v132_v11, %s281_s17 }
  0x7c   :  { %v40_v15 = vpop.permute.xlu0 %39 }
  0x80   :  { %v275_v20 = vpop.permute.xlu0 %274 }
  0x81   :  { %v276_v21 = vunpack.i.l.bf16 %v275_v20  ;;  %v277_v26 = vunpack.i.h.bf16 %v275_v20 }
  0xe8   :  { %v31_v12 = vpop.permute.xlu1 %30 }
  0xe9   :  { %v32_v13 = vsel %vm26_vm2, %v31_v12, %v25_v1 }
  0xea   :  { %v42_v17 = vmul.f32 %v40_v15, %v32_v13  ;;  %v37_v27 = vmul.f32 %v276_v21, %v32_v13 }
  0xec   :  { %v134_v14 = vpop.permute.xlu1 %133  ;;  %v51_v33 = vpack.c.bf16 %v277_v26, %v37_v27 }
  0xed   :  { %v135_v16 = vsel %vm26_vm2, %v134_v14, %v235_v4 }
  0xee   :  { %v137_v18 = vmul.f32 %v135_v16, %v40_v15  ;;  %v136_v31 = vmul.f32 %v276_v21, %v135_v16 }
  0xf0   :  { %v268_v19 = vpack.i.bf16 %v137_v18, %v42_v17 }
  0xf2   :  { %269 = vrot.lane.b32.xlu1 %v268_v19, %s284_s0 }
  0xf6   :  { %139 = vrot.lane.b32.xlu1 %v235_v4, %s283_s21 }
 0x164   :  { %v270_v22 = vpop.permute.xlu1 %269 }
 0x165   :  { %v272_v23 = vunpack.i.h.bf16 %v270_v22  ;;  %v271_v24 = vunpack.i.l.bf16 %v270_v22 }
 0x167   :  { %v147_v28 = vpack.c.bf16 %v272_v23, %v272_v23  ;;  %v52_v29 = vpack.c.bf16 %v271_v24, %v271_v24 }
 0x168   :  { %v140_v30 = vpop.permute.xlu1 %139 }
 0x169   :  { %159 = vrot.lane.b32.xlu1 %v147_v28, %s287_s22  ;;  %64 = vrot.lane.b32.xlu0 %v52_v29, %s287_s22  ;;  %v146_v32 = vpack.c.bf16 %v140_v30, %v136_v31 }
 0x16d   :  { %62 = vrot.lane.b32.xlu0 %v51_v33, %s287_s22  ;;  %157 = vrot.lane.b32.xlu1 %v146_v32, %s287_s22 }
 0x171   :  { %57 = vperm.xlu0 %278, %v54_v34   ;;  %152 = vperm.xlu1 %279, %v54_v34  }
 0x1db   :  { %v160_v35 = vpop.permute.xlu1 %159  ;;  %v65_v36 = vpop.permute.xlu0 %64 }
 0x1dc   :  { %v73_v37 = vsel %vm71_vm4, %v65_v36, 0  ;;  %v166_v38 = vsel %vm71_vm4, %v160_v35, 0 }
 0x1dd   :  { %245 = vmatpush3.bf16.msra.mxu0 %v73_v37  ;;  %253 = vmatpush3.bf16.msra.mxu1 %v166_v38 }
 0x1de   :  { %246 = vmatprep.subr.bf16.mxu0 %v280_v2  ;;  %254 = vmatprep.subr.bf16.mxu1 %v280_v2 }
 0x1df   :  { %v63_v39 = vpop.permute.xlu0 %62  ;;  %v158_v40 = vpop.permute.xlu1 %157 }
 0x1e1   :  { %247 = vmatpush3.bf16.msra.mxu0 %v63_v39  ;;  %255 = vmatpush3.bf16.msra.mxu1 %v158_v40 }
 0x1e4   :  { %249 = vmatmul.mubr.msk.bf16.vlgmr.msra.gmra.mxu0 %vm67_vm5, %v53_v41  ;;  %257 = vmatmul.mubr.msk.bf16.vlgmr.msra.gmra.mxu1 %vm67_vm5, %v148_v42 }
 0x1ec   :  { %v58_v43 = vpop.permute.xlu0 %57  ;;  %v153_v44 = vpop.permute.xlu1 %152 }
 0x2a4   :  { %v109_v45 = vpop.f32.mrf.mxu0  ;;  %v202_v46 = vpop.f32.mrf.mxu1 }
 0x2a5   :  { %v110_v47 = vadd.f32 %v109_v45, %v58_v43  ;;  %v203_v48 = vadd.f32 %v202_v46, %v153_v44 }
 0x2a6   :  { %v250_v49 = vpop.f32.mrf.mxu0  ;;  %v258_v50 = vpop.f32.mrf.mxu1 }
 0x2a7   :  { %v115_v51 = vpack.c.bf16 %v110_v47, %v110_v47  ;;  %v208_v52 = vpack.c.bf16 %v203_v48, %v203_v48  ;;  %v119_v53 = vsel %vm118_vm6, %v110_v47, 0.0  ;;  %v123_v54 = vmul.f32 %v110_v47, %v110_v47 }
 0x2a8   :  { %v112_v55 = vpop.f32.mrf.mxu0  ;;  %120 = vadd.xlane.f32.xlu1 %v119_v53  ;;  %v205_v56 = vpop.f32.mrf.mxu1  ;;  %v215_v57 = vmul.f32 %v203_v48, %v203_v48  ;;  %v211_v62 = vsel %vm118_vm6, %v203_v48, 0.0 }
 0x2a9   :  { %117 = vst.msk [vmem:[%s352_s3] sm:$0xf] %vm116_vm7, %v115_v51  ;;  %237 = vst.msk [vmem:[%s352_s3 + $0x4] sm:$0xf] %vm116_vm7, %v208_v52  ;;  %v124_v58 = vsel %vm118_vm6, %v123_v54, 0.0 }
 0x2aa   :  { %v251_v59 = vpop.f32.mrf.mxu0  ;;  %125 = vadd.xlane.f32.xlu0 %v124_v58  ;;  %v259_v60 = vpop.f32.mrf.mxu1  ;;  %v216_v61 = vsel %vm118_vm6, %v215_v57, 0.0 }
 0x2ac   :  { %217 = vadd.xlane.f32.xlu1 %v216_v61 }
 0x2ae   :  { %212 = vadd.xlane.f32.xlu0 %v211_v62 }
 0x331   :  { %v121_v63 = vpop.xlane.xlu1 %120 }
 0x333   :  { %v126_v0 = vpop.xlane.xlu0 %125 }
 0x335   :  { %v218_v1 = vpop.xlane.xlu1 %217 }
 0x336   :  { %v219_v3 = vadd.f32 %v218_v1, %v126_v0 }
 0x337   :  { %v213_v2 = vpop.xlane.xlu0 %212 }
 0x338   :  { %v214_v4 = vadd.f32 %v213_v2, %v121_v63 }
 0x33a   :  { %v221_v5 = vsel %vm220_vm8, %v214_v4, %v219_v3 }
 0x33b   :  { %223 = vst.msk [vmem:[%s353_s4] sm:$0xff] %vm222_vm9, %v221_v5 }

// kernel: residual_block.4
= control target key start
LH: loop header
LB: loop body
LE: loop exit
PB: predicated region body
PF: predicated region fallthrough
CT: control target
= control target key end

     0   :  { %v318_v0 = vmov 0   ;;  %v319_v3 = vmov 0.0   ;;  %v23_v17 = vlaneseq  ;;  %vm48_vm0 = vcmask 1047680   ;;  %s323_s27 = smov 14   ;;  %s325_s28 = smov 113   ;;  %s404_s2 = inlined_call_operand.vmem [shape: f32[8,1], index: 2, kind: input, shape index: {}]   ;;  %s405_s1 = inlined_call_operand.vmem [shape: f32[8,1], index: 1, kind: input, shape index: {}]   ;;  %s406_s0 = inlined_call_operand.vmem [shape: bf16[2,8,16], index: 0, kind: input, shape index: {}]   ;;  %s407_s4 = inlined_call_operand.vmem [shape: f32[8,1], index: 4, kind: input, shape index: {}]   ;;  %s408_s3 = inlined_call_operand.vmem [shape: bf16[8,24], index: 3, kind: input, shape index: {}]   ;;  %s409_s5 = inlined_call_operand.vmem [shape: bf16[2,8,16], index: 5, kind: output, shape index: {0}]   ;;  %s410_s6 = inlined_call_operand.vmem [shape: f32[1,8,2], index: 6, kind: output, shape index: {1}]  }
   0x1   :  { %307 = vset.pattern.permute.xlu1 %v318_v0  ;;  %306 = vset.pattern.permute.xlu0 %v318_v0  ;;  %v40_v1 = vld [vmem:[%s404_s2] sm:$0xff]  ;;  %s322_s2 = smov 15   ;;  %vm324_vm3 = vmmov 0   ;;  %vm93_vm4 = vcmask 1043456   ;;  %vm89_vm5 = vcmask 195584   ;;  %vm140_vm6 = vcmask 130048  }
   0x2   :  { %v33_v2 = vld [vmem:[%s405_s1] sm:$0xff]  ;;  %43 = vperm.xlu1 %307, %v40_v1   ;;  %282 = vmatprep.subr.bf16.mxu0 %v319_v3  ;;  %s320_s1 = smov 16   ;;  %v24_v18 = vand.u32 127, %v23_v17  ;;  %vm138_vm7 = vcmask 125952   ;;  %vm258_vm8 = vcmask 7168   ;;  %vm260_vm9 = vcmask 15360  }
   0x3   :  { %36 = vperm.xlu0 %306, %v33_v2   ;;  %290 = vmatprep.subr.bf16.mxu1 %v319_v3  ;;  %v31_v4 = vld [vmem:[%s406_s0] sm:$0xff]   ;;  %s321_s0 = smov 1  }
   0x4   :  { %v32_v5 = vunpack.c.l.bf16 %v31_v4  ;;  %v152_v9 = vunpack.c.h.bf16 %v31_v4  ;;  %vm28_vm1 = vcmp.ne.s32.totalorder %v24_v18, 15  ;;  %vm25_vm2 = vcmp.ne.s32.totalorder %v24_v18, 0  ;;  %286 = vmatprep.mubr.msk.bf16.mxu0 %vm324_vm3, %v319_v3  ;;  %294 = vmatprep.mubr.msk.bf16.mxu1 %vm324_vm3, %v319_v3  ;;  %v76_v47 = vld [vmem:[%s407_s4] sm:$0xff] }
   0x5   :  { %v271_v21 = vsel %vm28_vm1, 1.0, %v319_v3  ;;  %v270_v24 = vsel %vm25_vm2, 1.0, %v319_v3  ;;  %v75_v54 = vld [vmem:[%s408_s3] sm:$0xf] }
   0x6   :  { %163 = vperm.xlu1 %307, %v40_v1   ;;  %v186_v55 = vld [vmem:[%s408_s3] sm:$0xf] }
   0x7   :  { %156 = vperm.xlu0 %306, %v33_v2  }
  0x7d   :  { %v44_v6 = vpop.permute.xlu1 %43 }
  0x7e   :  { %v37_v7 = vpop.permute.xlu0 %36 }
  0x7f   :  { %v39_v8 = vmul.f32 %v37_v7, %v32_v5 }
  0x81   :  { %v46_v10 = vadd.f32 %v44_v6, %v39_v8  ;;  %v164_v14 = vpop.permute.xlu1 %163 }
  0x82   :  { %v157_v11 = vpop.permute.xlu0 %156 }
  0x83   :  { %v47_v12 = vmax.f32 %v46_v10, 0.0  ;;  %v159_v13 = vmul.f32 %v157_v11, %v152_v9 }
  0x85   :  { %v166_v15 = vadd.f32 %v164_v14, %v159_v13  ;;  %49 = vrot.lane.b32.xlu0 %v47_v12, %s320_s1  ;;  %v313_v25 = vpack.i.bf16 %v47_v12, %v270_v24 }
  0x87   :  { %v167_v16 = vmax.f32 %v166_v15, 0.0 }
  0x89   :  { %168 = vrot.lane.b32.xlu1 %v167_v16, %s320_s1 }
  0xf7   :  { %v50_v19 = vpop.permute.xlu0 %49 }
  0xf8   :  { %v51_v20 = vsel %vm48_vm0, %v50_v19, %v47_v12 }
  0xf9   :  { %52 = vrot.lane.b32.xlu0 %v51_v20, %s320_s1 }
  0xfb   :  { %v169_v22 = vpop.permute.xlu1 %168 }
  0xfc   :  { %v170_v23 = vsel %vm48_vm0, %v169_v22, %v167_v16 }
  0xfd   :  { %171 = vrot.lane.b32.xlu1 %v170_v23, %s320_s1  ;;  %61 = vrot.lane.b32.xlu0 %v271_v21, %s321_s0 }
 0x101   :  { %314 = vrot.lane.b32.xlu0 %v313_v25, %s322_s2 }
 0x16b   :  { %v53_v26 = vpop.permute.xlu0 %52 }
 0x16c   :  { %v54_v27 = vsel %vm48_vm0, %v53_v26, %v47_v12 }
 0x16f   :  { %v172_v28 = vpop.permute.xlu1 %171  ;;  %v62_v29 = vpop.permute.xlu0 %61 }
 0x170   :  { %v173_v30 = vsel %vm48_vm0, %v172_v28, %v167_v16  ;;  %v64_v31 = vmul.f32 %v62_v29, %v54_v27 }
 0x171   :  { %v175_v32 = vmul.f32 %v173_v30, %v62_v29 }
 0x173   :  { %v308_v33 = vpack.i.bf16 %v175_v32, %v64_v31  ;;  %v315_v34 = vpop.permute.xlu0 %314 }
 0x174   :  { %v316_v35 = vunpack.i.l.bf16 %v315_v34  ;;  %v317_v43 = vunpack.i.h.bf16 %v315_v34 }
 0x175   :  { %309 = vrot.lane.b32.xlu1 %v308_v33, %s323_s27 }
 0x176   :  { %v59_v39 = vmul.f32 %v316_v35, %v54_v27  ;;  %v174_v44 = vmul.f32 %v316_v35, %v173_v30 }
 0x178   :  { %v73_v45 = vpack.c.bf16 %v317_v43, %v59_v39 }
 0x179   :  { %177 = vrot.lane.b32.xlu1 %v167_v16, %s322_s2 }
 0x1e7   :  { %v310_v36 = vpop.permute.xlu1 %309 }
 0x1e8   :  { %v312_v37 = vunpack.i.h.bf16 %v310_v36  ;;  %v311_v38 = vunpack.i.l.bf16 %v310_v36 }
 0x1ea   :  { %v185_v40 = vpack.c.bf16 %v312_v37, %v312_v37  ;;  %v74_v41 = vpack.c.bf16 %v311_v38, %v311_v38 }
 0x1eb   :  { %v178_v42 = vpop.permute.xlu1 %177 }
 0x1ec   :  { %197 = vrot.lane.b32.xlu1 %v185_v40, %s325_s28  ;;  %86 = vrot.lane.b32.xlu0 %v74_v41, %s325_s28  ;;  %v184_v46 = vpack.c.bf16 %v178_v42, %v174_v44 }
 0x1f0   :  { %84 = vrot.lane.b32.xlu0 %v73_v45, %s325_s28  ;;  %195 = vrot.lane.b32.xlu1 %v184_v46, %s325_s28 }
 0x1f4   :  { %79 = vperm.xlu0 %306, %v76_v47   ;;  %190 = vperm.xlu1 %307, %v76_v47  }
 0x25e   :  { %v198_v48 = vpop.permute.xlu1 %197  ;;  %v87_v49 = vpop.permute.xlu0 %86 }
 0x25f   :  { %v95_v50 = vsel %vm93_vm4, %v87_v49, 0  ;;  %v204_v51 = vsel %vm93_vm4, %v198_v48, 0 }
 0x260   :  { %283 = vmatpush3.bf16.msra.mxu0 %v95_v50  ;;  %291 = vmatpush3.bf16.msra.mxu1 %v204_v51 }
 0x261   :  { %284 = vmatprep.subr.bf16.mxu0 %v319_v3  ;;  %292 = vmatprep.subr.bf16.mxu1 %v319_v3 }
 0x262   :  { %v85_v52 = vpop.permute.xlu0 %84  ;;  %v196_v53 = vpop.permute.xlu1 %195 }
 0x264   :  { %285 = vmatpush3.bf16.msra.mxu0 %v85_v52  ;;  %293 = vmatpush3.bf16.msra.mxu1 %v196_v53 }
 0x267   :  { %287 = vmatmul.mubr.msk.bf16.vlgmr.msra.gmra.mxu0 %vm89_vm5, %v75_v54  ;;  %295 = vmatmul.mubr.msk.bf16.vlgmr.msra.gmra.mxu1 %vm89_vm5, %v186_v55 }
 0x26f   :  { %v80_v56 = vpop.permute.xlu0 %79  ;;  %v191_v57 = vpop.permute.xlu1 %190 }
 0x327   :  { %v131_v58 = vpop.f32.mrf.mxu0  ;;  %v240_v59 = vpop.f32.mrf.mxu1 }
 0x328   :  { %v132_v60 = vadd.f32 %v131_v58, %v80_v56  ;;  %v241_v61 = vadd.f32 %v240_v59, %v191_v57 }
 0x329   :  { %v288_v62 = vpop.f32.mrf.mxu0  ;;  %v296_v63 = vpop.f32.mrf.mxu1 }
 0x32a   :  { %v137_v0 = vpack.c.bf16 %v132_v60, %v132_v60  ;;  %v246_v1 = vpack.c.bf16 %v241_v61, %v241_v61  ;;  %v141_v2 = vsel %vm140_vm6, %v132_v60, 0.0  ;;  %v145_v3 = vmul.f32 %v132_v60, %v132_v60 }
 0x32b   :  { %v134_v4 = vpop.f32.mrf.mxu0  ;;  %142 = vadd.xlane.f32.xlu0 %v141_v2  ;;  %v243_v5 = vpop.f32.mrf.mxu1  ;;  %v249_v9 = vsel %vm140_vm6, %v241_v61, 0.0  ;;  %v253_v10 = vmul.f32 %v241_v61, %v241_v61 }
 0x32c   :  { %139 = vst.msk [vmem:[%s409_s5] sm:$0xf] %vm138_vm7, %v137_v0  ;;  %275 = vst.msk [vmem:[%s409_s5 + $0x4] sm:$0xf] %vm138_vm7, %v246_v1  ;;  %v146_v6 = vsel %vm140_vm6, %v145_v3, 0.0 }
 0x32d   :  { %v289_v7 = vpop.f32.mrf.mxu0  ;;  %147 = vadd.xlane.f32.xlu1 %v146_v6  ;;  %v297_v8 = vpop.f32.mrf.mxu1  ;;  %v254_v11 = vsel %vm140_vm6, %v253_v10, 0.0 }
 0x32f   :  { %250 = vadd.xlane.f32.xlu0 %v249_v9 }
 0x333   :  { %255 = vadd.xlane.f32.xlu0 %v254_v11 }
 0x3b4   :  { %v143_v12 = vpop.xlane.xlu0 %142 }
 0x3b6   :  { %v148_v14 = vpop.xlane.xlu1 %147 }
 0x3b8   :  { %v251_v13 = vpop.xlane.xlu0 %250 }
 0x3b9   :  { %v252_v16 = vadd.f32 %v251_v13, %v143_v12 }
 0x3bc   :  { %v256_v15 = vpop.xlane.xlu0 %255 }
 0x3bd   :  { %v257_v17 = vadd.f32 %v256_v15, %v148_v14 }
 0x3bf   :  { %v259_v18 = vsel %vm258_vm8, %v252_v16, %v257_v17 }
 0x3c0   :  { %261 = vst.msk [vmem:[%s410_s6] sm:$0xff] %vm260_vm9, %v259_v18 }

// kernel: residual_block.5
= control target key start
LH: loop header
LB: loop body
LE: loop exit
PB: predicated region body
PF: predicated region fallthrough
CT: control target
= control target key end

     0   :  { %v293_v2 = vmov 0.0   ;;  %vm32_vm0 = vcmask 64512   ;;  %vm294_vm1 = vmmov 0   ;;  %s358_s0 = inlined_call_operand.vmem [shape: bf16[2,8,16], index: 0, kind: input, shape index: {}]   ;;  %s359_s1 = inlined_call_operand.vmem [shape: f32[2,8,16], index: 1, kind: input, shape index: {}]   ;;  %s360_s2 = inlined_call_operand.vmem [shape: f32[8,8], index: 2, kind: input, shape index: {}]   ;;  %s361_s3 = inlined_call_operand.vmem [shape: f32[8,1], index: 3, kind: input, shape index: {}]   ;;  %s362_s4 = inlined_call_operand.vmem [shape: f32[8,1], index: 4, kind: input, shape index: {}]   ;;  %s363_s5 = inlined_call_operand.vmem [shape: f32[8,1], index: 5, kind: input, shape index: {}]   ;;  %s364_s6 = inlined_call_operand.hbm [shape: f32[2,8,16], index: 6, kind: output, shape index: {}]  }
   0x1   :  { %v25_v0 = vld [vmem:[%s359_s1] sm:$0xff]  ;;  %v246_v1 = vld [vmem:[%s359_s1 + $0x8] sm:$0xff]  ;;  %253 = vmatprep.subr.mxu0 %v293_v2  ;;  %258 = vmatprep.subr.mxu1 %v293_v2 }
   0x2   :  { %v24_v3 = vld [vmem:[%s360_s2] sm:$0xff]  ;;  %254 = vmatpush3.msra.mxu0 %v25_v0  ;;  %255 = vmatprep.mubr.msk.f32.mxu0 %vm294_vm1, %v293_v2 }
   0x3   :  { %11 = vsyncpa [#allocation3], 0  ;;  %259 = vmatpush3.msra.mxu1 %v246_v1  ;;  %260 = vmatprep.mubr.msk.f32.mxu1 %vm294_vm1, %v293_v2  ;;  %v108_v4 = vld [vmem:[%s362_s4] sm:$0xff]  ;;  %v295_v6 = vmov 0   ;;  %vm124_vm2 = vcmask 130048  }
   0x4   :  { %v26_v5 = vld [vmem:[%s361_s3] sm:$0xff]  ;;  %256 = vmatmul.mubr.msk.f32.vlgmr.msra.gmra.mxu0 %vm32_vm0, %v24_v3  ;;  %261 = vmatmul.mubr.msk.f32.vlgmr.msra.gmra.mxu1 %vm32_vm0, %v24_v3  ;;  %s296_s3 = smov [#allocation2]  }
   0x5   :  { %270 = vset.pattern.permute.xlu1 %v295_v6  ;;  %269 = vset.pattern.permute.xlu0 %v295_v6  ;;  %v115_v7 = vld [vmem:[%s363_s5] sm:$0xff]  ;;  %s234_s5 = sshll.u32 %s296_s3, 4  ;;  %s235_s5 = int_to_ptr.vmem [resolvable:$true] %s234_s5 }
   0x6   :  { %111 = vperm.xlu0 %269, %v108_v4   ;;  %29 = vperm.xlu1 %270, %v26_v5   ;;  %v106_v10 = vld [vmem:[%s358_s0] sm:$0xff]   ;;  %s271_s0 = scalar_lea.vmem %s235_s5, 256  ;;  %p276_p1 = scmp.lt.s32.totalorder %s235_s5, %s235_s5 }
   0x7   :  { %v107_v12 = vunpack.c.l.bf16 %v106_v10  ;;  %v210_v13 = vunpack.c.h.bf16 %v106_v10  ;;  %p272_p0 = scmp.ne.s32.totalorder %s235_s5, %s271_s0  ;;  %p277_p2 = scmp.lt.s32.totalorder %s271_s0, %s271_s0 }
   0x9   :  { %p278_p3 = por %p277_p2, %p276_p1 }
   0xa   :  { %214 = vperm.xlu0 %269, %v108_v4   ;;  %118 = vperm.xlu1 %270, %v115_v7  }
   0xb   :  { %p279_p4 = pnand %p278_p3, %p272_p0 }
   0xe   :  { %132 = vperm.xlu0 %269, %v26_v5   ;;  %221 = vperm.xlu1 %270, %v115_v7  }
  0x81   :  { %v30_v8 = vpop.permute.xlu1 %29  ;;  %v112_v9 = vpop.permute.xlu0 %111 }
  0x82   :  { %v114_v15 = vmul.f32 %v112_v9, %v107_v12 }
  0x85   :  { %v119_v11 = vpop.permute.xlu1 %118  ;;  %v215_v14 = vpop.permute.xlu0 %214 }
  0x86   :  { %v217_v16 = vmul.f32 %v215_v14, %v210_v13  ;;  %v121_v21 = vadd.f32 %v119_v11, %v114_v15 }
  0x89   :  { %v222_v17 = vpop.permute.xlu1 %221  ;;  %v133_v18 = vpop.permute.xlu0 %132 }
  0x8a   :  { %v224_v22 = vadd.f32 %v222_v17, %v217_v16 }
  0xc4   :  { %v102_v19 = vpop.f32.mrf.mxu0  ;;  %v204_v20 = vpop.f32.mrf.mxu1 }
  0xc5   :  { %v103_v23 = vadd.f32 %v102_v19, %v30_v8  ;;  %v205_v24 = vadd.f32 %v204_v20, %v133_v18 }
  0xc6   :  { %v257_v25 = vpop.f32.mrf.mxu0  ;;  %v262_v26 = vpop.f32.mrf.mxu1 }
  0xc7   :  { %v122_v27 = vadd.f32 %v121_v21, %v103_v23  ;;  %v225_v28 = vadd.f32 %v224_v22, %v205_v24 }
  0xc9   :  { %v123_v29 = vmax.f32 %v122_v27, 0.0  ;;  %v226_v30 = vmax.f32 %v225_v28, 0.0 }
  0xcb   :  { %125 = vst.msk [vmem:[#allocation2] sm:$0xff] %vm124_vm2, %v123_v29  ;;  %228 = vst.msk [vmem:[#allocation2 + $0x8] sm:$0xff] %vm124_vm2, %v226_v30 }
  0xcc   :  { %282 = shalt.err (!%p279_p4)
}
  0xcd   :  { %s297_s8 = smov 128   ;;  %s298_s9 = smov 8  }
  0xce   :  { %240 = dma.vmem_to_hbm [thread:$0]  %s235_s5, 256, %s364_s6, [#allocation3], %s297_s8, %s297_s8, %s298_s9  }
  0xcf   :  { %291 = dma.done.wait [#allocation3], 256  }
  0xd0   :  { %292 = vsyncadd [#allocation3], 4294967040 }
  0xd1   :  { %244 = vsyncpa [#allocation3], 1 }

</bundles_post_ra>
